<compile_context>
chip_gen: v7x
topology: tpu7x:2x2x1
jax: 0.10.0
libtpu: 0.0.40
codegen_flags: <defaults>
</compile_context>

<pallas_src>
import jax
import jax.numpy as jnp
from jax.experimental import pallas as pl
from jax.experimental.pallas import tpu as pltpu

# ---- small, forward-consistent shapes -------------------------------------
B, C, H, W = 2, 3, 8, 16          # batch of small NCHW images
D = C * H * W                     # 384 flattened features (lane-aligned K)
WCOL = 64                         # columns predicted by the (stand-in) HorizonNet
BON_LEN = 2 * WCOL                # bon has 2 channels (ceiling/floor boundary)
POOL1 = BON_LEN // 2              # after first avg_pool1d(kernel_size=2)
EMB = POOL1 // 2                  # after second avg_pool1d(kernel_size=2) -> 32
OUT_PAD = 128                     # lane-dense output slab width (cols >= EMB are zero)
B_PAD = 8                         # sublane-dense batch slab (rows >= B are zero)
EPS = 1e-6                        # F.normalize eps


def _avg_pool_matrix(length):
    """(length, length//2) matrix M with M[2j, j] = M[2j+1, j] = 0.5.
    Right-multiplying by M is exactly avg_pool1d(kernel_size=2, stride=2)."""
    eye = jnp.eye(length // 2, dtype=jnp.float32)
    return jnp.repeat(eye, 2, axis=0) * 0.5


def image_embed_kernel(x_ref, w_ref, b_ref, out_ref):
    # Single fused matmul: head weights already folded with both avg_pool1d(k=2)
    # steps (done once at setup).  f32 x f32 -> f32 accumulation on the MXU.
    y = jnp.dot(x_ref[...], w_ref[...],
                preferred_element_type=jnp.float32) + b_ref[...]        # (B_PAD, OUT_PAD)

    # Padded lanes (columns >= EMB) are exactly zero (zero weight + zero bias),
    # so the reduction over all 128 lanes equals the reduction over the real
    # EMB lanes.  Padded batch rows are independent junk (normalized per row)
    # and get sliced off in the wrapper.
    ss = jnp.sum(y * y, axis=1, keepdims=True)                          # (B_PAD, 1)

    # F.normalize(p=2, dim=1, eps): x / max(||x||, eps) == x * rsqrt(max(ss, eps^2))
    out_ref[...] = y * jax.lax.rsqrt(jnp.maximum(ss, EPS * EPS))


def make_image_embedding_net(wbon, bbon):
    """One-time setup: fold the two avg_pool1d(k=2) steps into the head weights,
    pad to lane-dense shapes, pre-broadcast the bias, and return a jitted
    forward(x_nchw) -> (B, EMB) closure.  No per-call eager dispatches remain."""
    # Fold bon.view -> avg_pool1d(k=2) -> avg_pool1d(k=2) into the head weights.
    # avg-pooling is linear, so the composition is exact.
    p1 = _avg_pool_matrix(BON_LEN)                       # (2*WCOL, WCOL)
    p2 = _avg_pool_matrix(POOL1)                         # (WCOL,  WCOL//2)
    wfused = jnp.asarray(wbon, jnp.float32) @ p1 @ p2    # (D, EMB)
    bfused = jnp.asarray(bbon, jnp.float32) @ p1 @ p2    # (1, EMB)

    # Zero-pad to a lane-dense (D, 128) weight and pre-broadcast the bias to the
    # full (B_PAD, 128) slab so the kernel needs no in-kernel broadcast.
    wpad = jnp.zeros((D, OUT_PAD), jnp.float32).at[:, :EMB].set(wfused)
    bpad = jnp.zeros((B_PAD, OUT_PAD), jnp.float32).at[:, :EMB].set(
        jnp.broadcast_to(bfused, (B_PAD, EMB)))

    # Advisory cost hint so XLA can schedule around the tiny custom call.
    cost = pl.CostEstimate(
        flops=2 * B_PAD * D * OUT_PAD,
        transcendentals=B_PAD,
        bytes_accessed=4 * (B_PAD * D + D * OUT_PAD + B_PAD * OUT_PAD + B_PAD * OUT_PAD),
    )

    call = pl.pallas_call(
        image_embed_kernel,
        out_shape=jax.ShapeDtypeStruct((B_PAD, OUT_PAD), jnp.float32),
        in_specs=[
            pl.BlockSpec(memory_space=pltpu.MemorySpace.VMEM),  # x     (f32)
            pl.BlockSpec(memory_space=pltpu.MemorySpace.VMEM),  # wpad  (f32)
            pl.BlockSpec(memory_space=pltpu.MemorySpace.VMEM),  # bpad  (f32)
        ],
        out_specs=pl.BlockSpec(memory_space=pltpu.MemorySpace.VMEM),
        cost_estimate=cost,
    )

    @jax.jit
    def forward(x_nchw):
        b = x_nchw.shape[0]
        assert b <= B_PAD, "increase B_PAD (or add a batch grid) for larger batches"
        # Single reshape; no dtype round-trips.  Pad the batch (sublane) dim to
        # 8 zero rows so the input load and the output store are full-vreg.
        x = x_nchw.astype(jnp.float32).reshape(b, D)
        x = jnp.zeros((B_PAD, D), jnp.float32).at[:b, :].set(x)
        out_padded = call(x, wpad, bpad)                 # (B_PAD, OUT_PAD)
        # cor is returned by HorizonNet but discarded by ImageEmbeddingNet.forward,
        # so it is never computed.  Slice off padding inside the jit (fused).
        return out_padded[:b, :EMB]

    return forward


if __name__ == "__main__":
    key = jax.random.PRNGKey(0)
    k_x, k_wb, k_bb = jax.random.split(key, 3)

    # deterministic example input (NCHW, like the PyTorch module expects)
    x = jax.random.normal(k_x, (B, C, H, W), dtype=jnp.float32)

    # deterministic stand-in parameters for the HorizonNet bon head
    wbon = jax.random.normal(k_wb, (D, BON_LEN), dtype=jnp.float32) * 0.02
    bbon = jax.random.normal(k_bb, (1, BON_LEN), dtype=jnp.float32) * 0.02

    forward = make_image_embedding_net(wbon, bbon)       # one-time setup/fold
    out = forward(x)
    out = jax.block_until_ready(out)

    assert out.shape == (B, EMB), out.shape
    # sanity: rows are unit-norm after F.normalize
    norms = jnp.sqrt(jnp.sum(out * out, axis=1))
    assert bool(jnp.all(jnp.abs(norms - 1.0) < 1e-4)), norms

    print("KERNEL_OK")
</pallas_src>

<mosaic_0001>
module attributes {stable_mosaic.version = 11 : i64} {
  func.func @image_embed_kernel(%arg0: memref<8x384xf32, #tpu.memory_space<vmem>>, %arg1: memref<384x128xf32, #tpu.memory_space<vmem>>, %arg2: memref<8x128xf32, #tpu.memory_space<vmem>>, %arg3: memref<8x128xf32, #tpu.memory_space<vmem>>) attributes {dimension_semantics = [], scalar_prefetch = 0 : i64, scratch_operands = 0 : i64, tpu.core_type = #tpu.core_type<tc>} {
    %c0 = arith.constant 0 : index
    %c0_0 = arith.constant 0 : index
    %0 = vector.load %arg0[%c0, %c0_0] : memref<8x384xf32, #tpu.memory_space<vmem>>, vector<8x384xf32>
    %c0_1 = arith.constant 0 : index
    %c0_2 = arith.constant 0 : index
    %1 = vector.load %arg1[%c0_1, %c0_2] : memref<384x128xf32, #tpu.memory_space<vmem>>, vector<384x128xf32>
    %cst = arith.constant dense<0.000000e+00> : vector<8x128xf32>
    %2 = tpu.matmul %0, %1, %cst {dimension_numbers = #tpu.dot_dimension_numbers<[1], [0], [0], [1], [0, 0, 1, 1], [], []>} : vector<8x384xf32>, vector<384x128xf32>, vector<8x128xf32> -> vector<8x128xf32>
    %c0_3 = arith.constant 0 : index
    %c0_4 = arith.constant 0 : index
    %3 = vector.load %arg2[%c0_3, %c0_4] : memref<8x128xf32, #tpu.memory_space<vmem>>, vector<8x128xf32>
    %4 = arith.addf %2, %3 : vector<8x128xf32>
    %5 = arith.mulf %4, %4 : vector<8x128xf32>
    %cst_5 = arith.constant dense<0.000000e+00> : vector<8xf32>
    %6 = vector.multi_reduction <add>, %5, %cst_5 [1] : vector<8x128xf32> to vector<8xf32>
    %7 = vector.shape_cast %6 : vector<8xf32> to vector<8x1xf32>
    %cst_6 = arith.constant 9.99999996E-13 : f32
    %8 = vector.broadcast %cst_6 : f32 to vector<8x1xf32>
    %9 = arith.maximumf %7, %8 : vector<8x1xf32>
    %10 = math.rsqrt %9 : vector<8x1xf32>
    %11 = vector.broadcast %10 : vector<8x1xf32> to vector<8x128xf32>
    %12 = arith.mulf %4, %11 : vector<8x128xf32>
    %c0_7 = arith.constant 0 : index
    %c0_8 = arith.constant 0 : index
    %13 = vector.load %arg3[%c0_7, %c0_8] : memref<8x128xf32, #tpu.memory_space<vmem>>, vector<8x128xf32>
    tpu.vector_store %arg3[%c0_7, %c0_8], %12 {strides = array<i32>} : memref<8x128xf32, #tpu.memory_space<vmem>>, vector<8x128xf32>,
    return
  }
}

</mosaic_0001>

<bundles_post_ra>
// kernel: forward.1
= control target key start
LH: loop header
LB: loop body
LE: loop exit
PB: predicated region body
PF: predicated region fallthrough
CT: control target
= control target key end

     0   :  { %8 = vsyncpa [#allocation3], 0  ;;  %s407_s12 = smov [#allocation2]   ;;  %s468_s0 = inlined_call_operand.vmem [shape: f32[8,384], index: 0, kind: input, shape index: {}]   ;;  %s469_s1 = inlined_call_operand.hbm [shape: f32[384,128], index: 1, kind: input, shape index: {}]   ;;  %s470_s2 = inlined_call_operand.vmem [shape: f32[8,128], index: 2, kind: input, shape index: {}]   ;;  %s471_s3 = inlined_call_operand.vmem [shape: f32[8,128], index: 3, kind: output, shape index: {}]  }
   0x1   :  { %s16_s13 = sshll.u32 %s407_s12, 4  ;;  %s383_s16 = scalar_lea.hbm %s469_s1, 6144  ;;  %s17_s13 = int_to_ptr.vmem [resolvable:$true] %s16_s13 }
   0x2   :  { %p384_p0 = scmp.ne.s32.totalorder %s469_s1, %s383_s16  ;;  %p387_p1 = scmp.lt.u32.totalorder %s383_s16, %s469_s1 }
   0x4   :  { %p389_p2 = pnand %p387_p1, %p384_p0 }
   0x6   :  { %392 = shalt.err (!%p389_p2)
}
   0x7   :  { %s393_s21 = scalar_lea.vmem %s17_s13, 6144  ;;  %p398_p4 = scmp.lt.s32.totalorder %s17_s13, %s17_s13 }
   0x8   :  { %p394_p3 = scmp.ne.s32.totalorder %s17_s13, %s393_s21  ;;  %p399_p5 = scmp.lt.s32.totalorder %s393_s21, %s393_s21 }
   0xa   :  { %p400_p6 = por %p399_p5, %p398_p4 }
   0xc   :  { %p401_p7 = pnand %p400_p6, %p394_p3 }
   0xe   :  { %404 = shalt.err (!%p401_p7)
}
   0xf   :  { %s408_s22 = smov 128   ;;  %s409_s23 = smov 8  }
  0x10   :  { %22 = dma.hbm_to_vmem [thread:$0]  %s469_s1, 6144, %s17_s13, [#allocation3], %s408_s22, %s408_s22, %s409_s23  }
  0x11   :  { %405 = dma.done.wait [#allocation3], 6144  }
  0x12   :  { %406 = vsyncadd [#allocation3], 4294961152  ;;  %v410_v0 = vmov 0.0|0.0   ;;  %vm411_vm0 = vmmov 0   ;;  %v412_v1 = vmov 0.0   ;;  %v47_v2 = vld [vmem:[#allocation2 + $0x80] sm:$0xff] }
  0x13   :  { %351 = vmatprep.subr.bf16.mxu1 %v410_v0  ;;  %316 = vmatprep.mubr.msk.f32.mxu1 %vm411_vm0, %v412_v1  ;;  %v48_v3 = vld [vmem:[#allocation2 + $0x88] sm:$0xff]  ;;  %v31_v4 = vld [vmem:[#allocation2] sm:$0xff]  ;;  %v49_v7 = vld [vmem:[#allocation2 + $0x90] sm:$0xff] }
  0x14   :  { %v319_v5 = vpack.c.bf16 %v48_v3, %v47_v2  ;;  %v32_v6 = vld [vmem:[#allocation2 + $0x8] sm:$0xff]  ;;  %v50_v8 = vld [vmem:[#allocation2 + $0x98] sm:$0xff]  ;;  %v33_v11 = vld [vmem:[#allocation2 + $0x10] sm:$0xff] }
  0x15   :  { %v321_v9 = vpack.c.bf16 %v32_v6, %v31_v4  ;;  %v323_v10 = vpack.c.bf16 %v50_v8, %v49_v7  ;;  %v34_v12 = vld [vmem:[#allocation2 + $0x18] sm:$0xff]  ;;  %v63_v13 = vld [vmem:[#allocation2 + $0x100] sm:$0xff]  ;;  %v64_v14 = vld [vmem:[#allocation2 + $0x108] sm:$0xff] }
  0x16   :  { %320 = vmatprep.subr.bf16.mxu0 %v319_v5  ;;  %v51_v15 = vld [vmem:[#allocation2 + $0xa0] sm:$0xff]  ;;  %v52_v16 = vld [vmem:[#allocation2 + $0xa8] sm:$0xff]  ;;  %v325_v17 = vpack.c.bf16 %v34_v12, %v33_v11  ;;  %v352_v18 = vpack.c.bf16 %v64_v14, %v63_v13  ;;  %v65_v19 = vld [vmem:[#allocation2 + $0x110] sm:$0xff] }
  0x17   :  { %322 = vmatpush3.bf16.msra.mxu0 %v321_v9  ;;  %v327_v20 = vpack.c.bf16 %v52_v16, %v51_v15  ;;  %v35_v21 = vld [vmem:[#allocation2 + $0x20] sm:$0xff]  ;;  %v36_v22 = vld [vmem:[#allocation2 + $0x28] sm:$0xff]  ;;  %v66_v23 = vld [vmem:[#allocation2 + $0x118] sm:$0xff] }
  0x18   :  { %324 = vmatprep.subr.bf16.mxu0 %v323_v10  ;;  %353 = vmatpush3.bf16.msra.mxu1 %v352_v18  ;;  %v355_v24 = vpack.c.bf16 %v66_v23, %v65_v19  ;;  %v53_v25 = vld [vmem:[#allocation2 + $0xb0] sm:$0xff]  ;;  %v54_v26 = vld [vmem:[#allocation2 + $0xb8] sm:$0xff]  ;;  %v67_v27 = vld [vmem:[#allocation2 + $0x120] sm:$0xff]  ;;  %v329_v29 = vpack.c.bf16 %v36_v22, %v35_v21 }
  0x19   :  { %354 = vmatprep.subr.bf16.mxu1 %v410_v0  ;;  %v68_v28 = vld [vmem:[#allocation2 + $0x128] sm:$0xff]  ;;  %v331_v30 = vpack.c.bf16 %v54_v26, %v53_v25  ;;  %v37_v31 = vld [vmem:[#allocation2 + $0x30] sm:$0xff]  ;;  %v38_v32 = vld [vmem:[#allocation2 + $0x38] sm:$0xff] }
  0x1a   :  { %v358_v33 = vpack.c.bf16 %v68_v28, %v67_v27  ;;  %v55_v34 = vld [vmem:[#allocation2 + $0xc0] sm:$0xff]  ;;  %v56_v35 = vld [vmem:[#allocation2 + $0xc8] sm:$0xff]  ;;  %v69_v36 = vld [vmem:[#allocation2 + $0x130] sm:$0xff]  ;;  %v333_v38 = vpack.c.bf16 %v38_v32, %v37_v31 }
  0x1b   :  { %326 = vmatpush3.bf16.msra.mxu0 %v325_v17  ;;  %v70_v37 = vld [vmem:[#allocation2 + $0x138] sm:$0xff]  ;;  %v335_v39 = vpack.c.bf16 %v56_v35, %v55_v34  ;;  %v39_v40 = vld [vmem:[#allocation2 + $0x40] sm:$0xff]  ;;  %v40_v41 = vld [vmem:[#allocation2 + $0x48] sm:$0xff] }
  0x1c   :  { %328 = vmatprep.subr.bf16.mxu0 %v327_v20  ;;  %356 = vmatpush3.bf16.msra.mxu1 %v355_v24  ;;  %v361_v42 = vpack.c.bf16 %v70_v37, %v69_v36  ;;  %v57_v43 = vld [vmem:[#allocation2 + $0xd0] sm:$0xff]  ;;  %v58_v44 = vld [vmem:[#allocation2 + $0xd8] sm:$0xff]  ;;  %v71_v45 = vld [vmem:[#allocation2 + $0x140] sm:$0xff]  ;;  %v337_v48 = vpack.c.bf16 %v40_v41, %v39_v40 }
  0x1d   :  { %357 = vmatprep.subr.bf16.mxu1 %v410_v0  ;;  %v72_v46 = vld [vmem:[#allocation2 + $0x148] sm:$0xff]  ;;  %v339_v49 = vpack.c.bf16 %v58_v44, %v57_v43  ;;  %v41_v50 = vld [vmem:[#allocation2 + $0x50] sm:$0xff]  ;;  %v42_v51 = vld [vmem:[#allocation2 + $0x58] sm:$0xff] }
  0x1e   :  { %v29_v47 = vld [vmem:[%s468_s0 + $0x8] sm:$0xff]  ;;  %v364_v52 = vpack.c.bf16 %v72_v46, %v71_v45  ;;  %v59_v53 = vld [vmem:[#allocation2 + $0xe0] sm:$0xff]  ;;  %v73_v55 = vld [vmem:[#allocation2 + $0x150] sm:$0xff]  ;;  %v341_v57 = vpack.c.bf16 %v42_v51, %v41_v50 }
  0x1f   :  { %330 = vmatpush3.bf16.msra.mxu0 %v329_v29  ;;  %144 = vmatprep.mubr.f32.mxu0 %v29_v47  ;;  %v60_v54 = vld [vmem:[#allocation2 + $0xe8] sm:$0xff]  ;;  %v74_v56 = vld [vmem:[#allocation2 + $0x158] sm:$0xff]  ;;  %v43_v59 = vld [vmem:[#allocation2 + $0x60] sm:$0xff] }
  0x20   :  { %332 = vmatprep.subr.bf16.mxu0 %v331_v30  ;;  %359 = vmatpush3.bf16.msra.mxu1 %v358_v33  ;;  %v343_v58 = vpack.c.bf16 %v60_v54, %v59_v53  ;;  %v44_v60 = vld [vmem:[#allocation2 + $0x68] sm:$0xff]  ;;  %v367_v61 = vpack.c.bf16 %v74_v56, %v73_v55  ;;  %v61_v62 = vld [vmem:[#allocation2 + $0xf0] sm:$0xff]  ;;  %v62_v63 = vld [vmem:[#allocation2 + $0xf8] sm:$0xff] }
  0x21   :  { %360 = vmatprep.subr.bf16.mxu1 %v410_v0  ;;  %v75_v1 = vld [vmem:[#allocation2 + $0x160] sm:$0xff]  ;;  %v76_v2 = vld [vmem:[#allocation2 + $0x168] sm:$0xff]  ;;  %v345_v3 = vpack.c.bf16 %v44_v60, %v43_v59  ;;  %v347_v4 = vpack.c.bf16 %v62_v63, %v61_v62  ;;  %v45_v5 = vld [vmem:[#allocation2 + $0x70] sm:$0xff] }
  0x22   :  { %v46_v6 = vld [vmem:[#allocation2 + $0x78] sm:$0xff]  ;;  %v370_v7 = vpack.c.bf16 %v76_v2, %v75_v1  ;;  %v77_v8 = vld [vmem:[#allocation2 + $0x170] sm:$0xff]  ;;  %v28_v12 = vld [vmem:[%s468_s0] sm:$0xff] }
  0x23   :  { %334 = vmatpush3.bf16.msra.mxu0 %v333_v38  ;;  %v78_v9 = vld [vmem:[#allocation2 + $0x178] sm:$0xff]  ;;  %v349_v10 = vpack.c.bf16 %v46_v6, %v45_v5  ;;  %v30_v13 = vld [vmem:[%s468_s0 + $0x10] sm:$0xff]  ;;  %v79_v16 = vld [vmem:[%s470_s2] sm:$0xff] }
  0x24   :  { %336 = vmatprep.subr.bf16.mxu0 %v335_v39  ;;  %362 = vmatpush3.bf16.msra.mxu1 %v361_v42  ;;  %v373_v11 = vpack.c.bf16 %v78_v9, %v77_v8 }
  0x25   :  { %363 = vmatprep.subr.bf16.mxu1 %v410_v0 }
  0x27   :  { %338 = vmatpush3.bf16.msra.mxu0 %v337_v48 }
  0x28   :  { %340 = vmatprep.subr.bf16.mxu0 %v339_v49  ;;  %365 = vmatpush3.bf16.msra.mxu1 %v364_v52 }
  0x29   :  { %366 = vmatprep.subr.bf16.mxu1 %v410_v0 }
  0x2b   :  { %342 = vmatpush3.bf16.msra.mxu0 %v341_v57 }
  0x2c   :  { %344 = vmatprep.subr.bf16.mxu0 %v343_v58  ;;  %368 = vmatpush3.bf16.msra.mxu1 %v367_v61 }
  0x2d   :  { %369 = vmatprep.subr.bf16.mxu1 %v410_v0 }
  0x2f   :  { %346 = vmatpush3.bf16.msra.mxu0 %v345_v3 }
  0x30   :  { %348 = vmatprep.subr.bf16.mxu0 %v347_v4  ;;  %371 = vmatpush3.bf16.msra.mxu1 %v370_v7 }
  0x31   :  { %372 = vmatprep.subr.bf16.mxu1 %v410_v0 }
  0x33   :  { %350 = vmatpush3.bf16.msra.mxu0 %v349_v10 }
  0x34   :  { %374 = vmatpush3.bf16.msra.mxu1 %v373_v11 }
  0x36   :  { %145 = vmatmul.mubr.f32.vlgmr.msra.gmra.mrb[0].mxu0 %v28_v12 }
  0x37   :  { %317 = vmatmul.mubr.f32.vlgmr.msra.gmra.mrb[0].mxu1 %v30_v13 }
 0x109   :  { %v264_v14 = vpop.f32.mrb[0].mxu0 }
 0x10a   :  { %v265_v15 = vpop.f32.mrb[1].mxu0  ;;  %v216_v0 = vpop.f32.mrb[0].mxu1 }
 0x10b   :  { %v266_v17 = vadd.f32 %v265_v15, %v264_v14  ;;  %v318_v18 = vpop.f32.mrb[1].mxu1 }
 0x10d   :  { %v147_v19 = vadd.f32 %v266_v17, %v79_v16 }
 0x10f   :  { %v217_v20 = vadd.f32 %v216_v0, %v147_v19 }
 0x111   :  { %v220_v21 = vmul.f32 %v217_v20, %v217_v20 }
 0x113   :  { %221 = vadd.xlane.f32.xlu0 %v220_v21 }
 0x1a0   :  { %v222_v22 = vpop.xlane.xlu0 %221 }
 0x1a1   :  { %v223_v23 = vmax.f32 %v222_v22, 1e-12 }
 0x1a3   :  { %381 = vrsqrt.f32 %v223_v23 }
 0x1ad   :  { %v382_v24 = vpop.eup %381 }
 0x1ae   :  { %v225_v25 = vmul.f32 %v382_v24, %v217_v20 }
 0x1b0   :  { %226 = vst [vmem:[%s471_s3] sm:$0xff] %v225_v25 }
 0x1b1   :  { %231 = vsyncpa [#allocation3], 1 }

</bundles_post_ra>
